<compile_context>
chip_gen: v6e
topology: v6e:2x2x1
jax: 0.10.0
libtpu: 0.0.40
codegen_flags: <defaults>
</compile_context>

<pallas_src>
import jax
import jax.numpy as jnp
from jax.experimental import pallas as pl
from jax.experimental.pallas import tpu as pltpu

GAMMA = 2.0
ALPHA0 = 0.1
NUM_CLASSES = 2
LANES = 128
SUBLANES = 8


def _focal_loss_kernel(alpha_ref, x0_ref, x1_ref, lab_ref, out_ref):
    # Tiles are (tile_rows, 128), lane-dense. alpha_ref is a (2,) f32 SMEM ref.
    x0 = x0_ref[...].astype(jnp.float32)
    x1 = x1_ref[...].astype(jnp.float32)
    lab = lab_ref[...]                         # int32, -1 marks padding

    # 2-class log-softmax, fully elementwise (no cross-lane work).
    m = jnp.maximum(x0, x1)
    lse = jnp.log(jnp.exp(x0 - m) + jnp.exp(x1 - m))
    x_sel = jnp.where(lab == 1, x1, x0)
    logpt = (x_sel - m) - lse                  # log p_t  (<= 0)
    pt = jnp.exp(logpt)

    a0 = alpha_ref[0]
    a1 = alpha_ref[1]
    alpha_t = jnp.where(lab == 1, a1, a0)

    d = 1.0 - pt                               # explicit square, not jnp.power
    loss = -alpha_t * d * d * logpt

    # zero out padded elements
    loss = jnp.where(lab >= 0, loss, 0.0)

    # Per-block partial sum folded down to one (8, 128) vreg: only elementwise
    # vreg adds (VPU); the single tiny reduction to a scalar happens outside.
    tr = loss.shape[0]
    out_ref[...] = loss.reshape(tr // SUBLANES, SUBLANES, LANES).sum(axis=0)


def focal_loss_pallas(preds, labels, alpha, *, tile_rows=512):
    """Sum-reduced focal loss (gamma=2) matching the PyTorch module.

    preds: (..., 2) float logits, labels: (...,) ints in {0,1}, alpha: (2,) floats.
    Returns a scalar (size_average=False -> sum).
    """
    C = preds.shape[-1]
    assert C == NUM_CLASSES, "lane-dense kernel is specialized to num_classes=2"
    # TODO(synk): generalize to num_classes > 2 (needs (N, C) layout + lane gather).

    preds2d = preds.reshape(-1, C)
    labels1d = labels.reshape(-1).astype(jnp.int32)
    N = preds2d.shape[0]

    # Adapt tile size (rows of 128 lanes), keep it a multiple of 8 sublanes.
    rows_needed = -(-N // LANES)
    rows_rounded = -(-rows_needed // SUBLANES) * SUBLANES
    tile_rows = max(SUBLANES, min(tile_rows, rows_rounded))
    tile_rows = -(-tile_rows // SUBLANES) * SUBLANES
    num_blocks = -(-rows_rounded // tile_rows)
    padded_rows = num_blocks * tile_rows
    pad = padded_rows * LANES - N

    x0 = preds2d[:, 0]
    x1 = preds2d[:, 1]
    if pad:
        x0 = jnp.pad(x0, (0, pad))
        x1 = jnp.pad(x1, (0, pad))
        labels1d = jnp.pad(labels1d, (0, pad), constant_values=-1)  # sentinel mask

    x0 = x0.reshape(padded_rows, LANES)
    x1 = x1.reshape(padded_rows, LANES)
    lab = labels1d.reshape(padded_rows, LANES)
    alpha_sm = alpha.reshape(-1).astype(jnp.float32)

    partials = pl.pallas_call(
        _focal_loss_kernel,
        out_shape=jax.ShapeDtypeStruct((num_blocks * SUBLANES, LANES), jnp.float32),
        grid_spec=pltpu.PrefetchScalarGridSpec(
            num_scalar_prefetch=1,              # alpha -> SMEM
            grid=(num_blocks,),
            in_specs=[
                pl.BlockSpec((tile_rows, LANES), lambda i, a: (i, 0)),  # x0
                pl.BlockSpec((tile_rows, LANES), lambda i, a: (i, 0)),  # x1
                pl.BlockSpec((tile_rows, LANES), lambda i, a: (i, 0)),  # labels
            ],
            out_specs=pl.BlockSpec((SUBLANES, LANES), lambda i, a: (i, 0)),
        ),
        compiler_params=pltpu.CompilerParams(
            dimension_semantics=("parallel",),  # independent per-block partials
        ),
    )(alpha_sm, x0, x1, lab)

    return jnp.sum(partials)


def focal_loss_ref(preds, labels, alpha, gamma=2):
    """Pure-JAX reference matching the PyTorch module."""
    C = preds.shape[-1]
    preds2d = preds.reshape(-1, C).astype(jnp.float32)
    labels1d = labels.reshape(-1)
    logsoft = jax.nn.log_softmax(preds2d, axis=1)
    logpt = jnp.take_along_axis(logsoft, labels1d[:, None], axis=1)[:, 0]
    pt = jnp.exp(logpt)
    a = alpha[labels1d]
    return jnp.sum(-a * (1.0 - pt) ** gamma * logpt)


if __name__ == "__main__":
    key = jax.random.PRNGKey(0)
    k1, k2 = jax.random.split(key)

    # small shapes consistent with the module: batch=4, seq=32, num_classes=2
    B, S, C = 4, 32, NUM_CLASSES
    preds = jax.random.normal(k1, (B, S, C), dtype=jnp.float32)
    labels = jax.random.randint(k2, (B, S), 0, C, dtype=jnp.int32)

    # alpha init as in the module's __init__ (scalar alpha=0.1, num_classes=2)
    alpha = jnp.zeros((C,), dtype=jnp.float32)
    alpha = alpha.at[0].add(ALPHA0)
    alpha = alpha.at[1:].add(1.0 - ALPHA0)

    out = focal_loss_pallas(preds, labels, alpha)
    jax.block_until_ready(out)

    ref = focal_loss_ref(preds, labels, alpha)
    assert jnp.allclose(out, ref, rtol=1e-5, atol=1e-5), (out, ref)

    print("KERNEL_OK")
</pallas_src>

<mosaic_0001>
module attributes {stable_mosaic.version = 11 : i64} {
  func.func @_focal_loss_kernel(%arg0: i32, %arg1: memref<2xf32, #tpu.memory_space<smem>>, %arg2: memref<8x128xf32, #tpu.memory_space<vmem>>, %arg3: memref<8x128xf32, #tpu.memory_space<vmem>>, %arg4: memref<8x128xi32, #tpu.memory_space<vmem>>, %arg5: memref<8x128xf32, #tpu.memory_space<vmem>>) attributes {dimension_semantics = [#tpu.dimension_semantics<parallel>], iteration_bounds = array<i64: 1>, scalar_prefetch = 1 : i64, scratch_operands = 0 : i64, tpu.core_type = #tpu.core_type<tc>, window_params = [{transform_indices = @transform_0, window_bounds = array<i64: 8, 128>}, {transform_indices = @transform_1, window_bounds = array<i64: 8, 128>}, {transform_indices = @transform_2, window_bounds = array<i64: 8, 128>}, {transform_indices = @transform_3, window_bounds = array<i64: 8, 128>}]} {
    %c0 = arith.constant 0 : index
    %c0_0 = arith.constant 0 : index
    %0 = vector.load %arg2[%c0, %c0_0] : memref<8x128xf32, #tpu.memory_space<vmem>>, vector<8x128xf32>
    %c0_1 = arith.constant 0 : index
    %c0_2 = arith.constant 0 : index
    %1 = vector.load %arg3[%c0_1, %c0_2] : memref<8x128xf32, #tpu.memory_space<vmem>>, vector<8x128xf32>
    %c0_3 = arith.constant 0 : index
    %c0_4 = arith.constant 0 : index
    %2 = vector.load %arg4[%c0_3, %c0_4] : memref<8x128xi32, #tpu.memory_space<vmem>>, vector<8x128xi32>
    %3 = arith.maximumf %0, %1 : vector<8x128xf32>
    %4 = arith.subf %0, %3 : vector<8x128xf32>
    %5 = math.exp %4 : vector<8x128xf32>
    %6 = arith.subf %1, %3 : vector<8x128xf32>
    %7 = math.exp %6 : vector<8x128xf32>
    %8 = arith.addf %5, %7 : vector<8x128xf32>
    %9 = math.log %8 : vector<8x128xf32>
    %c1_i32 = arith.constant 1 : i32
    %10 = vector.broadcast %c1_i32 : i32 to vector<8x128xi32>
    %11 = arith.cmpi eq, %2, %10 : vector<8x128xi32>
    %12 = arith.select %11, %1, %0 : vector<8x128xi1>, vector<8x128xf32>
    %13 = arith.subf %12, %3 : vector<8x128xf32>
    %14 = arith.subf %13, %9 : vector<8x128xf32>
    %15 = math.exp %14 : vector<8x128xf32>
    %c0_5 = arith.constant 0 : index
    %16 = memref.load %arg1[%c0_5] : memref<2xf32, #tpu.memory_space<smem>>
    %c1 = arith.constant 1 : index
    %17 = memref.load %arg1[%c1] : memref<2xf32, #tpu.memory_space<smem>>
    %c1_i32_6 = arith.constant 1 : i32
    %18 = vector.broadcast %c1_i32_6 : i32 to vector<8x128xi32>
    %19 = arith.cmpi eq, %2, %18 : vector<8x128xi32>
    %20 = vector.broadcast %17 : f32 to vector<8x128xf32>
    %21 = vector.broadcast %16 : f32 to vector<8x128xf32>
    %22 = arith.select %19, %20, %21 : vector<8x128xi1>, vector<8x128xf32>
    %cst = arith.constant 1.000000e+00 : f32
    %23 = vector.broadcast %cst : f32 to vector<8x128xf32>
    %24 = arith.subf %23, %15 : vector<8x128xf32>
    %cst_7 = arith.constant 0.000000e+00 : f32
    %25 = vector.broadcast %cst_7 : f32 to vector<8x128xf32>
    %26 = arith.subf %25, %22 : vector<8x128xf32>
    %27 = arith.mulf %26, %24 : vector<8x128xf32>
    %28 = arith.mulf %27, %24 : vector<8x128xf32>
    %29 = arith.mulf %28, %14 : vector<8x128xf32>
    %c0_i32 = arith.constant 0 : i32
    %30 = vector.broadcast %c0_i32 : i32 to vector<8x128xi32>
    %31 = arith.cmpi sge, %2, %30 : vector<8x128xi32>
    %cst_8 = arith.constant 0.000000e+00 : f32
    %32 = vector.broadcast %cst_8 : f32 to vector<8x128xf32>
    %33 = arith.select %31, %29, %32 : vector<8x128xi1>, vector<8x128xf32>
    %34 = vector.shape_cast %33 : vector<8x128xf32> to vector<1x8x128xf32>
    %cst_9 = arith.constant dense<0.000000e+00> : vector<8x128xf32>
    %35 = vector.multi_reduction <add>, %34, %cst_9 [0] : vector<1x8x128xf32> to vector<8x128xf32>
    %c0_10 = arith.constant 0 : index
    %c0_11 = arith.constant 0 : index
    %36 = vector.load %arg5[%c0_10, %c0_11] : memref<8x128xf32, #tpu.memory_space<vmem>>, vector<8x128xf32>
    tpu.vector_store %arg5[%c0_10, %c0_11], %35 {strides = array<i32>} : memref<8x128xf32, #tpu.memory_space<vmem>>, vector<8x128xf32>,
    return
  }
  func.func @transform_0(%arg0: i32, %arg1: memref<2xf32, #tpu.memory_space<smem>>) -> (i32, i32) {
    %c0_i32 = arith.constant 0 : i32
    %c0_i32_0 = arith.constant 0 : i32
    return %arg0, %c0_i32 : i32, i32
  }
  func.func @transform_1(%arg0: i32, %arg1: memref<2xf32, #tpu.memory_space<smem>>) -> (i32, i32) {
    %c0_i32 = arith.constant 0 : i32
    %c0_i32_0 = arith.constant 0 : i32
    return %arg0, %c0_i32 : i32, i32
  }
  func.func @transform_2(%arg0: i32, %arg1: memref<2xf32, #tpu.memory_space<smem>>) -> (i32, i32) {
    %c0_i32 = arith.constant 0 : i32
    %c0_i32_0 = arith.constant 0 : i32
    return %arg0, %c0_i32 : i32, i32
  }
  func.func @transform_3(%arg0: i32, %arg1: memref<2xf32, #tpu.memory_space<smem>>) -> (i32, i32) {
    %c0_i32 = arith.constant 0 : i32
    %c0_i32_0 = arith.constant 0 : i32
    return %arg0, %c0_i32 : i32, i32
  }
}

</mosaic_0001>

<bundles_post_ra>
// kernel: tpu_custom_call.1
= control target key start
LH: loop header
LB: loop body
LE: loop exit
PB: predicated region body
PF: predicated region fallthrough
CT: control target
= control target key end

     0   :  { %s214_s15 = smov [#allocation3]   ;;  %s259_s0 = inlined_call_operand.hbm [shape: f32[2], index: 0, kind: input, shape index: {}]   ;;  %s260_s1 = inlined_call_operand.hbm [shape: f32[8,128], index: 1, kind: input, shape index: {}]   ;;  %s261_s2 = inlined_call_operand.hbm [shape: f32[8,128], index: 2, kind: input, shape index: {}]   ;;  %s262_s3 = inlined_call_operand.hbm [shape: s32[8,128], index: 3, kind: input, shape index: {}]   ;;  %s263_s4 = inlined_call_operand.hbm [shape: f32[8,128], index: 4, kind: output, shape index: {}]  }
   0x1   :  { %10 = dma.hbm_to_smem %s259_s0, 16, %s214_s15, [#allocation2] }
   0x2   :  { %206 = dma.done.wait [#allocation2], 16 }
   0x3   :  { %207 = vsyncadd [#allocation2], 4294967280 }
   0x4   :  { %12 = sfence }
   0x5   :  { %13 = vsyncpa [#allocation5], 0 }
   0x6   :  { %14 = vsyncpa [#allocation8], 0 }
   0x7   :  { %15 = vsyncpa [#allocation6], 0  ;;  %s215_s18 = smov [#allocation7]   ;;  %s216_s20 = smov [#allocation4]  }
   0x8   :  { %s32_s19 = sshll.u32 %s215_s18, 4  ;;  %s22_s21 = sshll.u32 %s216_s20, 4  ;;  %s33_s19 = int_to_ptr.vmem [resolvable:$true] %s32_s19  ;;  %s23_s21 = int_to_ptr.vmem [resolvable:$true] %s22_s21 }
   0x9   :  { %s134_s22 = scalar_lea.vmem %s33_s19, 128  ;;  %p139_p1 = scmp.lt.s32.totalorder %s33_s19, %s33_s19 }
   0xa   :  { %p135_p0 = scmp.ne.s32.totalorder %s33_s19, %s134_s22  ;;  %p140_p2 = scmp.lt.s32.totalorder %s134_s22, %s134_s22 }
   0xc   :  { %p141_p3 = por %p140_p2, %p139_p1 }
   0xe   :  { %p142_p4 = pnand %p141_p3, %p135_p0 }
  0x10   :  { %145 = shalt.err (!%p142_p4)
}
  0x11   :  { %35 = dma.hbm_to_vmem [thread:$0]  %s261_s2, 128, %s33_s19, [#allocation8]  }
  0x12   :  { %s154_s24 = scalar_lea.vmem %s23_s21, 128  ;;  %p159_p6 = scmp.lt.s32.totalorder %s23_s21, %s23_s21 }
  0x13   :  { %p155_p5 = scmp.ne.s32.totalorder %s23_s21, %s154_s24  ;;  %p160_p7 = scmp.lt.s32.totalorder %s154_s24, %s154_s24 }
  0x15   :  { %p161_p8 = por %p160_p7, %p159_p6 }
  0x17   :  { %p162_p9 = pnand %p161_p8, %p155_p5 }
  0x19   :  { %165 = shalt.err (!%p162_p9)
}
  0x1a   :  { %25 = dma.hbm_to_vmem [thread:$0]  %s260_s1, 128, %s23_s21, [#allocation5]  }
  0x1b   :  { %s217_s27 = smov [#allocation9]  }
  0x1c   :  { %s42_s28 = sshll.u32 %s217_s27, 4  ;;  %s43_s28 = int_to_ptr.vmem [resolvable:$true] %s42_s28 }
  0x1d   :  { %s174_s29 = scalar_lea.vmem %s43_s28, 128  ;;  %p179_p11 = scmp.lt.s32.totalorder %s43_s28, %s43_s28 }
  0x1e   :  { %p175_p10 = scmp.ne.s32.totalorder %s43_s28, %s174_s29  ;;  %p180_p12 = scmp.lt.s32.totalorder %s174_s29, %s174_s29 }
  0x20   :  { %p181_p13 = por %p180_p12, %p179_p11 }
  0x22   :  { %p182_p0 = pnand %p181_p13, %p175_p10 }
  0x24   :  { %185 = shalt.err (!%p182_p0)
}
  0x25   :  { %45 = dma.hbm_to_vmem [thread:$0]  %s262_s3, 128, %s43_s28, [#allocation8]  }
  0x26   :  { %208 = dma.done.wait [#allocation5], 128  }
  0x27   :  { %209 = vsyncadd [#allocation5], 4294967168 }
  0x28   :  { %210 = dma.done.wait [#allocation8], 256  }
  0x29   :  { %211 = vsyncadd [#allocation8], 4294967040  ;;  %v55_v0 = vld [vmem:[#allocation4] sm:$0xff]  ;;  %v56_v1 = vld [vmem:[#allocation7] sm:$0xff]  ;;  %s74_s1 = sld [smem:[#allocation3]]  ;;  %s218_s5 = smov [#allocation10]  }
  0x2a   :  { %v58_v2 = vmax.f32 %v55_v0, %v56_v1  ;;  %v57_v10 = vld [vmem:[#allocation9] sm:$0xff]  ;;  %s104_s3 = sld [smem:[#allocation3 + $0x1]]  ;;  %s94_s6 = sshll.u32 %s218_s5, 4  ;;  %s95_s6 = int_to_ptr.vmem [resolvable:$true] %s94_s6 }
  0x2b   :  { %vm68_vm0 = vcmp.eq.s32.totalorder %v57_v10, 1  ;;  %vm84_vm1 = vcmp.ge.s32.totalorder %v57_v10, 0  ;;  %s186_s7 = scalar_lea.vmem %s95_s6, 128  ;;  %p191_p2 = scmp.lt.s32.totalorder %s95_s6, %s95_s6 }
  0x2c   :  { %v59_v3 = vsub.f32 %v55_v0, %v58_v2  ;;  %v62_v4 = vsub.f32 %v56_v1, %v58_v2  ;;  %v69_v11 = vsel %vm68_vm0, %v56_v1, %v55_v0  ;;  %p187_p1 = scmp.ne.s32.totalorder %s95_s6, %s186_s7  ;;  %p192_p3 = scmp.lt.s32.totalorder %s186_s7, %s186_s7 }
  0x2d   :  { %v70_v12 = vsub.f32 %v69_v11, %v58_v2 }
  0x2e   :  { %v60_v5 = vmul.f32 1.442695, %v59_v3  ;;  %v63_v6 = vmul.f32 1.442695, %v62_v4  ;;  %p193_p4 = por %p192_p3, %p191_p2 }
  0x2f   :  { %v77_v18 = vstv %s74_s1 }
  0x30   :  { %110 = vpow2.f32 %v60_v5  ;;  %v76_v17 = vstv %s104_s3  ;;  %p194_p5 = pnand %p193_p4, %p187_p1 }
  0x31   :  { %112 = vpow2.f32 %v63_v6  ;;  %v78_v19 = vsel %vm68_vm0, %v76_v17, %v77_v18 }
  0x32   :  { %v80_v20 = vsub.f32 0.0, %v78_v19 }
  0x3d   :  { %v111_v7 = vpop.eup %110 }
  0x3e   :  { %v113_v8 = vpop.eup %112 }
  0x3f   :  { %v65_v9 = vadd.f32 %v113_v8, %v111_v7 }
  0x41   :  { %114 = vlog2.f32 %v65_v9 }
  0x4e   :  { %v115_v13 = vpop.eup %114 }
  0x4f   :  { %v67_v14 = vmul.f32 0.6931472, %v115_v13 }
  0x51   :  { %v71_v15 = vsub.f32 %v70_v12, %v67_v14 }
  0x53   :  { %v72_v16 = vmul.f32 1.442695, %v71_v15 }
  0x55   :  { %116 = vpow2.f32 %v72_v16 }
  0x62   :  { %v117_v21 = vpop.eup %116 }
  0x63   :  { %v79_v22 = vsub.f32 1.0, %v117_v21 }
  0x65   :  { %v81_v23 = vmul.f32 %v80_v20, %v79_v22 }
  0x67   :  { %v82_v24 = vmul.f32 %v81_v23, %v79_v22 }
  0x69   :  { %v83_v25 = vmul.f32 %v82_v24, %v71_v15 }
  0x6b   :  { %v85_v26 = vsel %vm84_vm1, %v83_v25, 0.0 }
  0x6c   :  { %87 = vst [vmem:[#allocation10] sm:$0xff] %v85_v26 }
  0x6d   :  { %197 = shalt.err (!%p194_p5)
}
  0x6e   :  { %97 = dma.vmem_to_hbm [thread:$0]  %s95_s6, 128, %s263_s4, [#allocation6]  }
  0x6f   :  { %212 = dma.done.wait [#allocation6], 128  }
  0x70   :  { %213 = vsyncadd [#allocation6], 4294967168 }
  0x71   :  { %101 = vsyncpa [#allocation5], 1 }
  0x72   :  { %102 = vsyncpa [#allocation8], 1 }
  0x73   :  { %103 = vsyncpa [#allocation6], 1 }

</bundles_post_ra>
